<compile_context>
chip_gen: v5e
topology: v5e:2x2
jax: 0.10.0
libtpu: 0.0.40
codegen_flags: <defaults>
</compile_context>

<pallas_src>
import functools

import jax
import jax.numpy as jnp
from jax.experimental import pallas as pl
from jax.experimental.pallas import tpu as pltpu


LANE_PAD = 128  # decoder heads are padded to a full 128-lane output slab


# ---------------------------------------------------------------------------
# Pallas kernel: fused LSTMCell + decoder Linear + logit post-processing
# ---------------------------------------------------------------------------
def _controller_kernel(bi_ref,                       # scalar prefetch (unused in body)
                       xh_ref, c_ref,                # activations
                       w_lstm_ref, b_lstm_ref,       # fused LSTM params
                       wdec_ref, bdec_ref,           # selected (padded) decoder head
                       logits_ref, hx_ref, cx_ref,   # outputs
                       *, hid, inv_temp, tanh_c, train_mode):
    xh = xh_ref[...]                                  # (B, 2H) = [x | h]
    c = c_ref[...]                                    # (B, H)

    # One lane-dense gate matmul: (B, 2H) @ (2H, 4H) -> (B, 4H) == (B, 128).
    gates = (jnp.dot(xh, w_lstm_ref[...], preferred_element_type=jnp.float32)
             + b_lstm_ref[...])                       # bias (1, 4H) broadcasts

    # PyTorch LSTMCell gate order: i, f, g, o (static lane slices).
    i_g = jax.nn.sigmoid(gates[:, 0 * hid:1 * hid])
    f_g = jax.nn.sigmoid(gates[:, 1 * hid:2 * hid])
    g_g = jnp.tanh(gates[:, 2 * hid:3 * hid])
    o_g = jax.nn.sigmoid(gates[:, 3 * hid:4 * hid])

    cx = f_g * c + i_g * g_g
    hx = o_g * jnp.tanh(cx)

    # Decoder: hx @ W_dec_padded (H, 128) + b -> lane-dense (B, 128) logits.
    logits = (jnp.dot(hx, wdec_ref[...], preferred_element_type=jnp.float32)
              + bdec_ref[...])
    logits = logits * inv_temp                        # logits / softmax_temperature
    if train_mode:
        logits = tanh_c * jnp.tanh(logits)

    logits_ref[...] = logits
    hx_ref[...] = hx
    cx_ref[...] = cx


# ---------------------------------------------------------------------------
# One cached step executable per (batch, hid, config) — single compile for
# every block_idx (head selection happens via scalar prefetch at runtime).
# ---------------------------------------------------------------------------
@functools.lru_cache(maxsize=None)
def _build_step(batch, hid, softmax_temperature, tanh_c, train_mode):
    kernel = functools.partial(
        _controller_kernel,
        hid=hid,
        inv_temp=float(1.0 / softmax_temperature),
        tanh_c=float(tanh_c),
        train_mode=train_mode,
    )

    pallas_step = pl.pallas_call(
        kernel,
        out_shape=(
            jax.ShapeDtypeStruct((batch, LANE_PAD), jnp.float32),  # padded logits
            jax.ShapeDtypeStruct((batch, hid), jnp.float32),       # hx
            jax.ShapeDtypeStruct((batch, hid), jnp.float32),       # cx
        ),
        grid_spec=pltpu.PrefetchScalarGridSpec(
            num_scalar_prefetch=1,
            grid=(1,),
            in_specs=[
                pl.BlockSpec((batch, 2 * hid), lambda i, bi: (0, 0)),       # xh
                pl.BlockSpec((batch, hid), lambda i, bi: (0, 0)),           # c
                pl.BlockSpec((2 * hid, 4 * hid), lambda i, bi: (0, 0)),     # w_lstm
                pl.BlockSpec((1, 4 * hid), lambda i, bi: (0, 0)),           # b_lstm
                pl.BlockSpec((None, hid, LANE_PAD),
                             lambda i, bi: (bi[0], 0, 0)),                  # dec W (head)
                pl.BlockSpec((None, 1, LANE_PAD),
                             lambda i, bi: (bi[0], 0, 0)),                  # dec b (head)
            ],
            out_specs=(
                pl.BlockSpec((batch, LANE_PAD), lambda i, bi: (0, 0)),
                pl.BlockSpec((batch, hid), lambda i, bi: (0, 0)),
                pl.BlockSpec((batch, hid), lambda i, bi: (0, 0)),
            ),
        ),
        compiler_params=pltpu.CompilerParams(
            dimension_semantics=("arbitrary",)),
    )

    @jax.jit
    def step(block_idx, inputs, h, c, embedding, w_lstm, b_lstm,
             dec_w_pad, dec_b_pad):
        embed = jnp.take(embedding, inputs, axis=0)          # (B, H) gather
        xh = jnp.concatenate([embed, h], axis=1)             # (B, 2H)
        bi = jnp.reshape(block_idx, (1,)).astype(jnp.int32)  # scalar prefetch arg
        return pallas_step(bi, xh, c, w_lstm, b_lstm, dec_w_pad, dec_b_pad)

    return step


def controller_forward(inputs, hidden, block_idx, params, args):
    """Pallas-backed equivalent of Controller.forward.

    inputs:    (B,) int32 token ids
    hidden:    None or (hx, cx), each (B, H) float32
    block_idx: python int selecting the decoder head
    returns (logits, (hx, cx))
    """
    hid = args["controller_hid"]
    batch = inputs.shape[0]

    if hidden is None:
        h0 = jnp.zeros((batch, hid), jnp.float32)
        c0 = jnp.zeros((batch, hid), jnp.float32)
    else:
        h0, c0 = hidden

    step = _build_step(batch, hid,
                       float(args["softmax_temperature"]),
                       float(args["tanh_c"]),
                       args["mode"] == "train")

    logits_pad, hx, cx = step(block_idx, inputs, h0, c0,
                              params["embedding"],
                              params["w_lstm"], params["b_lstm"],
                              params["dec_w_pad"], params["dec_b_pad"])

    out_size = params["num_tokens"][block_idx]
    logits = logits_pad[:, :out_size]                 # drop the lane padding
    return logits, (hx, cx)


# ---------------------------------------------------------------------------
# Deterministic parameter construction (mirrors Controller.__init__ shapes),
# with all weight repacking done ONCE here (not per forward call).
# ---------------------------------------------------------------------------
def make_params(key, args):
    hid = args["controller_hid"]
    num_funcs = len(args["shared_rnn_activations"])
    num_blocks = args["num_blocks"]

    num_tokens = [num_funcs]
    for idx in range(num_blocks):
        num_tokens += [idx + 1, num_funcs]
    num_total_tokens = num_funcs + num_blocks + 1

    init = 0.1
    ks = jax.random.split(key, 5 + len(num_tokens))

    embedding = jax.random.uniform(ks[0], (num_total_tokens, hid),
                                   jnp.float32, -init, init)
    # torch LSTMCell: weight_ih (4H, H), weight_hh (4H, H), bias_ih/bias_hh (4H,)
    w_ih = jax.random.uniform(ks[1], (4 * hid, hid), jnp.float32, -init, init)
    w_hh = jax.random.uniform(ks[2], (4 * hid, hid), jnp.float32, -init, init)
    b_ih = jax.random.uniform(ks[3], (4 * hid,), jnp.float32, -init, init)
    b_hh = jax.random.uniform(ks[4], (4 * hid,), jnp.float32, -init, init)

    # Fused LSTM weight:  [x | h] (B,2H) @ w_lstm (2H,4H)
    #   == x @ w_ih.T + h @ w_hh.T   (gate columns ordered i|f|g|o).
    w_lstm = jnp.concatenate([w_ih.T, w_hh.T], axis=0)        # (2H, 4H)
    b_lstm = (b_ih + b_hh)[None, :]                           # (1, 4H)

    # Decoder heads: transposed, zero-padded to LANE_PAD lanes, stacked.
    n_heads = len(num_tokens)
    dec_w_pad = jnp.zeros((n_heads, hid, LANE_PAD), jnp.float32)
    dec_b_pad = jnp.zeros((n_heads, 1, LANE_PAD), jnp.float32)  # bias.fill_(0)
    for idx, size in enumerate(num_tokens):
        w = jax.random.uniform(ks[5 + idx], (size, hid), jnp.float32, -init, init)
        dec_w_pad = dec_w_pad.at[idx, :, :size].set(w.T)

    params = dict(
        embedding=embedding,
        w_lstm=w_lstm,
        b_lstm=b_lstm,
        dec_w_pad=dec_w_pad,
        dec_b_pad=dec_b_pad,
        num_tokens=tuple(num_tokens),
    )
    return params, num_tokens, num_total_tokens


# ---------------------------------------------------------------------------
if __name__ == "__main__":
    args = dict(
        shared_rnn_activations=["tanh", "relu", "sigmoid", "identity"],
        num_blocks=4,
        controller_hid=32,
        softmax_temperature=5.0,
        tanh_c=2.5,
        mode="train",
    )

    key = jax.random.PRNGKey(0)
    params, num_tokens, num_total_tokens = make_params(key, args)

    batch = 2
    # Same start token the sampler uses (num_total_tokens - 1), batched.
    inputs = jnp.full((batch,), num_total_tokens - 1, dtype=jnp.int32)
    hidden = None

    # Run two sequential forward steps (block_idx 0 then 1), as in sample().
    logits0, hidden = controller_forward(inputs, hidden, 0, params, args)
    next_inputs = jnp.zeros((batch,), jnp.int32)  # stand-in for sampled action
    logits1, hidden = controller_forward(next_inputs, hidden, 1, params, args)

    jax.block_until_ready((logits0, logits1, hidden))

    assert logits0.shape == (batch, num_tokens[0])
    assert logits1.shape == (batch, num_tokens[1])
    assert hidden[0].shape == (batch, args["controller_hid"])
    assert hidden[1].shape == (batch, args["controller_hid"])
    # TODO(synk): multinomial sampling / DAG construction (sample()) is host-side
    # control flow and stays outside the kernel.

    print("KERNEL_OK")
</pallas_src>

<mosaic_0001>
module attributes {stable_mosaic.version = 11 : i64} {
  func.func @_controller_kernel(%arg0: i32, %arg1: memref<1xi32, #tpu.memory_space<smem>>, %arg2: memref<2x64xf32, #tpu.memory_space<vmem>>, %arg3: memref<2x32xf32, #tpu.memory_space<vmem>>, %arg4: memref<64x128xf32, #tpu.memory_space<vmem>>, %arg5: memref<1x128xf32, #tpu.memory_space<vmem>>, %arg6: memref<1x32x128xf32, #tpu.memory_space<vmem>>, %arg7: memref<1x1x128xf32, #tpu.memory_space<vmem>>, %arg8: memref<2x128xf32, #tpu.memory_space<vmem>>, %arg9: memref<2x32xf32, #tpu.memory_space<vmem>>, %arg10: memref<2x32xf32, #tpu.memory_space<vmem>>) attributes {dimension_semantics = [#tpu.dimension_semantics<arbitrary>], iteration_bounds = array<i64: 1>, scalar_prefetch = 1 : i64, scratch_operands = 0 : i64, tpu.core_type = #tpu.core_type<tc>, window_params = [{pipeline_mode = #tpu.pipeline_mode<synchronous>, transform_indices = @transform_0, window_bounds = array<i64: 2, 64>}, {pipeline_mode = #tpu.pipeline_mode<synchronous>, transform_indices = @transform_1, window_bounds = array<i64: 2, 32>}, {pipeline_mode = #tpu.pipeline_mode<synchronous>, transform_indices = @transform_2, window_bounds = array<i64: 64, 128>}, {pipeline_mode = #tpu.pipeline_mode<synchronous>, transform_indices = @transform_3, window_bounds = array<i64: 1, 128>}, {transform_indices = @transform_4, window_bounds = array<i64: 1, 32, 128>}, {transform_indices = @transform_5, window_bounds = array<i64: 1, 1, 128>}, {pipeline_mode = #tpu.pipeline_mode<synchronous>, transform_indices = @transform_6, window_bounds = array<i64: 2, 128>}, {pipeline_mode = #tpu.pipeline_mode<synchronous>, transform_indices = @transform_7, window_bounds = array<i64: 2, 32>}, {pipeline_mode = #tpu.pipeline_mode<synchronous>, transform_indices = @transform_8, window_bounds = array<i64: 2, 32>}]} {
    %c0 = arith.constant 0 : index
    %c0_0 = arith.constant 0 : index
    %0 = vector.load %arg2[%c0, %c0_0] : memref<2x64xf32, #tpu.memory_space<vmem>>, vector<2x64xf32>
    %c0_1 = arith.constant 0 : index
    %c0_2 = arith.constant 0 : index
    %1 = vector.load %arg3[%c0_1, %c0_2] : memref<2x32xf32, #tpu.memory_space<vmem>>, vector<2x32xf32>
    %c0_3 = arith.constant 0 : index
    %c0_4 = arith.constant 0 : index
    %2 = vector.load %arg4[%c0_3, %c0_4] : memref<64x128xf32, #tpu.memory_space<vmem>>, vector<64x128xf32>
    %cst = arith.constant dense<0.000000e+00> : vector<2x128xf32>
    %3 = tpu.matmul %0, %2, %cst {dimension_numbers = #tpu.dot_dimension_numbers<[1], [0], [0], [1], [0, 0, 1, 1], [], []>} : vector<2x64xf32>, vector<64x128xf32>, vector<2x128xf32> -> vector<2x128xf32>
    %c0_5 = arith.constant 0 : index
    %c0_6 = arith.constant 0 : index
    %4 = vector.load %arg5[%c0_5, %c0_6] : memref<1x128xf32, #tpu.memory_space<vmem>>, vector<1x128xf32>
    %5 = vector.broadcast %4 : vector<1x128xf32> to vector<2x128xf32>
    %6 = arith.addf %3, %5 : vector<2x128xf32>
    %7 = vector.extract_strided_slice %6 {offsets = [0, 0], sizes = [2, 32], strides = [1, 1]} : vector<2x128xf32> to vector<2x32xf32>
    %8 = arith.negf %7 : vector<2x32xf32>
    %9 = math.exp %8 : vector<2x32xf32>
    %cst_7 = arith.constant 1.000000e+00 : f32
    %10 = vector.broadcast %cst_7 : f32 to vector<2x32xf32>
    %11 = arith.addf %10, %9 : vector<2x32xf32>
    %12 = arith.divf %10, %11 : vector<2x32xf32>
    %13 = vector.extract_strided_slice %6 {offsets = [0, 32], sizes = [2, 32], strides = [1, 1]} : vector<2x128xf32> to vector<2x32xf32>
    %14 = arith.negf %13 : vector<2x32xf32>
    %15 = math.exp %14 : vector<2x32xf32>
    %cst_8 = arith.constant 1.000000e+00 : f32
    %16 = vector.broadcast %cst_8 : f32 to vector<2x32xf32>
    %17 = arith.addf %16, %15 : vector<2x32xf32>
    %18 = arith.divf %16, %17 : vector<2x32xf32>
    %19 = vector.extract_strided_slice %6 {offsets = [0, 64], sizes = [2, 32], strides = [1, 1]} : vector<2x128xf32> to vector<2x32xf32>
    %20 = math.tanh %19 : vector<2x32xf32>
    %21 = vector.extract_strided_slice %6 {offsets = [0, 96], sizes = [2, 32], strides = [1, 1]} : vector<2x128xf32> to vector<2x32xf32>
    %22 = arith.negf %21 : vector<2x32xf32>
    %23 = math.exp %22 : vector<2x32xf32>
    %cst_9 = arith.constant 1.000000e+00 : f32
    %24 = vector.broadcast %cst_9 : f32 to vector<2x32xf32>
    %25 = arith.addf %24, %23 : vector<2x32xf32>
    %26 = arith.divf %24, %25 : vector<2x32xf32>
    %27 = arith.mulf %18, %1 : vector<2x32xf32>
    %28 = arith.mulf %12, %20 : vector<2x32xf32>
    %29 = arith.addf %27, %28 : vector<2x32xf32>
    %30 = math.tanh %29 : vector<2x32xf32>
    %31 = arith.mulf %26, %30 : vector<2x32xf32>
    %c0_10 = arith.constant 0 : index
    %c0_11 = arith.constant 0 : index
    %c0_12 = arith.constant 0 : index
    %32 = vector.load %arg6[%c0_10, %c0_11, %c0_12] : memref<1x32x128xf32, #tpu.memory_space<vmem>>, vector<1x32x128xf32>
    %33 = vector.shape_cast %32 : vector<1x32x128xf32> to vector<32x128xf32>
    %cst_13 = arith.constant dense<0.000000e+00> : vector<2x128xf32>
    %34 = tpu.matmul %31, %33, %cst_13 {dimension_numbers = #tpu.dot_dimension_numbers<[1], [0], [0], [1], [0, 0, 1, 1], [], []>} : vector<2x32xf32>, vector<32x128xf32>, vector<2x128xf32> -> vector<2x128xf32>
    %c0_14 = arith.constant 0 : index
    %c0_15 = arith.constant 0 : index
    %c0_16 = arith.constant 0 : index
    %35 = vector.load %arg7[%c0_14, %c0_15, %c0_16] : memref<1x1x128xf32, #tpu.memory_space<vmem>>, vector<1x1x128xf32>
    %36 = vector.shape_cast %35 : vector<1x1x128xf32> to vector<1x128xf32>
    %37 = vector.broadcast %36 : vector<1x128xf32> to vector<2x128xf32>
    %38 = arith.addf %34, %37 : vector<2x128xf32>
    %cst_17 = arith.constant 2.000000e-01 : f32
    %39 = vector.broadcast %cst_17 : f32 to vector<2x128xf32>
    %40 = arith.mulf %38, %39 : vector<2x128xf32>
    %41 = math.tanh %40 : vector<2x128xf32>
    %cst_18 = arith.constant 2.500000e+00 : f32
    %42 = vector.broadcast %cst_18 : f32 to vector<2x128xf32>
    %43 = arith.mulf %42, %41 : vector<2x128xf32>
    %c0_19 = arith.constant 0 : index
    %c0_20 = arith.constant 0 : index
    %44 = vector.load %arg8[%c0_19, %c0_20] : memref<2x128xf32, #tpu.memory_space<vmem>>, vector<2x128xf32>
    tpu.vector_store %arg8[%c0_19, %c0_20], %43 {strides = array<i32>} : memref<2x128xf32, #tpu.memory_space<vmem>>, vector<2x128xf32>,
    %c0_21 = arith.constant 0 : index
    %c0_22 = arith.constant 0 : index
    %45 = vector.load %arg9[%c0_21, %c0_22] : memref<2x32xf32, #tpu.memory_space<vmem>>, vector<2x32xf32>
    tpu.vector_store %arg9[%c0_21, %c0_22], %31 {strides = array<i32>} : memref<2x32xf32, #tpu.memory_space<vmem>>, vector<2x32xf32>,
    %c0_23 = arith.constant 0 : index
    %c0_24 = arith.constant 0 : index
    %46 = vector.load %arg10[%c0_23, %c0_24] : memref<2x32xf32, #tpu.memory_space<vmem>>, vector<2x32xf32>
    tpu.vector_store %arg10[%c0_23, %c0_24], %29 {strides = array<i32>} : memref<2x32xf32, #tpu.memory_space<vmem>>, vector<2x32xf32>,
    return
  }
  func.func @transform_0(%arg0: i32, %arg1: memref<1xi32, #tpu.memory_space<smem>>) -> (i32, i32) {
    %c0_i32 = arith.constant 0 : i32
    %c0_i32_0 = arith.constant 0 : i32
    %c0_i32_1 = arith.constant 0 : i32
    return %c0_i32, %c0_i32_0 : i32, i32
  }
  func.func @transform_1(%arg0: i32, %arg1: memref<1xi32, #tpu.memory_space<smem>>) -> (i32, i32) {
    %c0_i32 = arith.constant 0 : i32
    %c0_i32_0 = arith.constant 0 : i32
    %c0_i32_1 = arith.constant 0 : i32
    return %c0_i32, %c0_i32_0 : i32, i32
  }
  func.func @transform_2(%arg0: i32, %arg1: memref<1xi32, #tpu.memory_space<smem>>) -> (i32, i32) {
    %c0_i32 = arith.constant 0 : i32
    %c0_i32_0 = arith.constant 0 : i32
    %c0_i32_1 = arith.constant 0 : i32
    return %c0_i32, %c0_i32_0 : i32, i32
  }
  func.func @transform_3(%arg0: i32, %arg1: memref<1xi32, #tpu.memory_space<smem>>) -> (i32, i32) {
    %c0_i32 = arith.constant 0 : i32
    %c0_i32_0 = arith.constant 0 : i32
    %c0_i32_1 = arith.constant 0 : i32
    return %c0_i32, %c0_i32_0 : i32, i32
  }
  func.func @transform_4(%arg0: i32, %arg1: memref<1xi32, #tpu.memory_space<smem>>) -> (i32, i32, i32) {
    %c0 = arith.constant 0 : index
    %0 = memref.load %arg1[%c0] : memref<1xi32, #tpu.memory_space<smem>>
    %c0_i32 = arith.constant 0 : i32
    %c0_i32_0 = arith.constant 0 : i32
    %c0_i32_1 = arith.constant 0 : i32
    return %0, %c0_i32, %c0_i32_0 : i32, i32, i32
  }
  func.func @transform_5(%arg0: i32, %arg1: memref<1xi32, #tpu.memory_space<smem>>) -> (i32, i32, i32) {
    %c0 = arith.constant 0 : index
    %0 = memref.load %arg1[%c0] : memref<1xi32, #tpu.memory_space<smem>>
    %c0_i32 = arith.constant 0 : i32
    %c0_i32_0 = arith.constant 0 : i32
    %c0_i32_1 = arith.constant 0 : i32
    return %0, %c0_i32, %c0_i32_0 : i32, i32, i32
  }
  func.func @transform_6(%arg0: i32, %arg1: memref<1xi32, #tpu.memory_space<smem>>) -> (i32, i32) {
    %c0_i32 = arith.constant 0 : i32
    %c0_i32_0 = arith.constant 0 : i32
    %c0_i32_1 = arith.constant 0 : i32
    return %c0_i32, %c0_i32_0 : i32, i32
  }
  func.func @transform_7(%arg0: i32, %arg1: memref<1xi32, #tpu.memory_space<smem>>) -> (i32, i32) {
    %c0_i32 = arith.constant 0 : i32
    %c0_i32_0 = arith.constant 0 : i32
    %c0_i32_1 = arith.constant 0 : i32
    return %c0_i32, %c0_i32_0 : i32, i32
  }
  func.func @transform_8(%arg0: i32, %arg1: memref<1xi32, #tpu.memory_space<smem>>) -> (i32, i32) {
    %c0_i32 = arith.constant 0 : i32
    %c0_i32_0 = arith.constant 0 : i32
    %c0_i32_1 = arith.constant 0 : i32
    return %c0_i32, %c0_i32_0 : i32, i32
  }
}

</mosaic_0001>

<bundles_post_ra>
// kernel: step.1
= control target key start
LH: loop header
LB: loop body
LE: loop exit
PB: predicated region body
PF: predicated region fallthrough
CT: control target
= control target key end

     0   :  { %16 = vsyncpa [#allocation5], 0  ;;  %s531_s0 = inlined_call_operand.<no memory space> [shape: s32[1], index: 0, kind: input, shape index: {}]   ;;  %s532_s1 = inlined_call_operand.vmem [shape: f32[2,64], index: 1, kind: input, shape index: {}]   ;;  %s533_s2 = inlined_call_operand.vmem [shape: f32[2,32], index: 2, kind: input, shape index: {}]   ;;  %s534_s3 = inlined_call_operand.hbm [shape: f32[64,128], index: 3, kind: input, shape index: {}]   ;;  %s535_s4 = inlined_call_operand.vmem [shape: f32[1,128], index: 4, kind: input, shape index: {}]   ;;  %s536_s5 = inlined_call_operand.hbm [shape: f32[9,32,128], index: 5, kind: input, shape index: {}]   ;;  %s537_s6 = inlined_call_operand.vmem [shape: f32[9,1,128], index: 6, kind: input, shape index: {}]   ;;  %s538_s7 = inlined_call_operand.hbm [shape: f32[2,128], index: 7, kind: output, shape index: {0}]   ;;  %s539_s8 = inlined_call_operand.hbm [shape: f32[2,32], index: 8, kind: output, shape index: {1}]   ;;  %s540_s9 = inlined_call_operand.hbm [shape: f32[2,32], index: 9, kind: output, shape index: {2}]  }
   0x1   :  { %17 = vsyncpa [#allocation8], 0 }
   0x2   :  { %18 = vsyncpa [#allocation6], 0 }
   0x3   :  { %19 = vsyncpa [#allocation11], 0  ;;  %s28_s11 = sshll.u32 %s534_s3, 4  ;;  %s416_s12 = smov [#allocation4]   ;;  %s29_s11 = int_to_ptr.hbm [resolvable:$true] %s28_s11 }
   0x4   :  { %s30_s13 = sshll.u32 %s416_s12, 4  ;;  %s265_s16 = sshll.u32 %s531_s0, 5  ;;  %s31_s13 = int_to_ptr.vmem [resolvable:$true] %s30_s13 }
   0x5   :  { %s417_s17 = smov 128   ;;  %s418_s18 = smov 8  }
   0x6   :  { %36 = dma.hbm_to_vmem [thread:$0]  %s29_s11, 1024, %s31_s13, [#allocation5], %s417_s17, %s417_s17, %s418_s18  }
   0x7   :  { %s46_s21 = scalar_lea.hbm %s536_s5, %s265_s16  ;;  %s419_s23 = smov [#allocation7]  }
   0x8   :  { %s47_s22 = sshll.u32 %s46_s21, 4  ;;  %s49_s24 = sshll.u32 %s419_s23, 4  ;;  %s48_s22 = int_to_ptr.hbm [resolvable:$true] %s47_s22  ;;  %s50_s24 = int_to_ptr.vmem [resolvable:$true] %s49_s24 }
   0x9   :  { %s312_s3 = sshra.s32 %s48_s22, 4  ;;  %s316_s28 = scalar_lea.hbm %s536_s5, 288  ;;  %s313_s3 = int_to_ptr.hbm [resolvable:$true] %s312_s3 }
   0xa   :  { %s314_s25 = scalar_lea.hbm %s313_s3, 32  ;;  %p317_p1 = scmp.lt.s32.totalorder %s313_s3, %s536_s5 }
   0xb   :  { %p315_p0 = scmp.ne.s32.totalorder %s313_s3, %s314_s25  ;;  %p318_p2 = scmp.lt.s32.totalorder %s316_s28, %s314_s25 }
   0xd   :  { %p319_p3 = por %p318_p2, %p317_p1 }
   0xf   :  { %p320_p4 = pnand %p319_p3, %p315_p0 }
  0x11   :  { %323 = shalt.err (!%p320_p4)
}
  0x12   :  { %55 = dma.hbm_to_vmem [thread:$0]  %s48_s22, 512, %s50_s24, [#allocation8], %s417_s17, %s417_s17, %s418_s18  }
  0x13   :  { %408 = dma.done.wait [#allocation5], 1024  }
  0x14   :  { %409 = vsyncadd [#allocation5], 4294966272 }
  0x15   :  { %410 = dma.done.wait [#allocation8], 512  }
  0x16   :  { %411 = vsyncadd [#allocation8], 4294966784  ;;  %v90_v0 = vld [vmem:[#allocation4 + $0x38] sm:$0xff]  ;;  %v89_v1 = vld [vmem:[#allocation4 + $0x30] sm:$0xff]  ;;  %vm95_vm0 = vcmask 523264   ;;  %s420_s13 = smov 64  }
  0x17   :  { %107 = vmatpush.msra.mxu0 %v90_v0  ;;  %v88_v2 = vld [vmem:[#allocation4 + $0x28] sm:$0xff]  ;;  %v87_v3 = vld [vmem:[#allocation4 + $0x20] sm:$0xff]  ;;  %v86_v4 = vld [vmem:[#allocation4 + $0x18] sm:$0xff]  ;;  %s421_s16 = smov 32   ;;  %p77_p5 = scmp.lt.s32.totalorder %s531_s0, 8  ;;  %vm199_vm5 = vcmask 254976  }
  0x18   :  { %v85_v5 = vld [vmem:[#allocation4 + $0x10] sm:$0xff]  ;;  %v84_v6 = vld [vmem:[#allocation4 + $0x8] sm:$0xff]  ;;  %v83_v7 = vld [vmem:[#allocation4] sm:$0xff]  ;;  %s422_s21 = smov 96   ;;  %vm171_vm6 = vcmask 261120   ;;  %s423_s22 = smov [#allocation10]  }
  0x19   :  { %108 = vmatpush.msra.mxu0 %v89_v1  ;;  %v81_v8 = vld [vmem:[%s532_s1] sm:$0x3]  ;;  %s542_s0 = smov (!%p77_p5, %s531_s0), 8  ;;  %v163_v34 = vld [vmem:[#allocation7 + $0x18] sm:$0xff]  ;;  %v162_v35 = vld [vmem:[#allocation7 + $0x10] sm:$0xff]  ;;  %s222_s23 = sshll.u32 %s423_s22, 4  ;;  %s223_s23 = int_to_ptr.vmem [resolvable:$true] %s222_s23 }
  0x1a   :  { %v276_v9 = vld [vmem:[%s535_s4] ss:$0 sm:$0xff]  ;;  %s79_s20 = scalar_lea.vmem %s537_s6, %s542_s0  ;;  %186 = vmatpush.msra.mxu1 %v163_v34  ;;  %v161_v36 = vld [vmem:[#allocation7 + $0x8] sm:$0xff]  ;;  %s224_s25 = sshll.u32 %s539_s8, 4  ;;  %s225_s25 = int_to_ptr.hbm [resolvable:$true] %s224_s25 }
  0x1b   :  { %109 = vmatpush.msra.mxu0 %v88_v2  ;;  %v82_v13 = vld [vmem:[%s533_s2] sm:$0x3]  ;;  %s424_s26 = smov [#allocation12]   ;;  %s235_s30 = sshll.u32 %s540_s9, 4  ;;  %s236_s30 = int_to_ptr.hbm [resolvable:$true] %s235_s30 }
  0x1c   :  { %187 = vmatpush.msra.mxu1 %v162_v35  ;;  %v160_v37 = vld [vmem:[#allocation7] sm:$0xff]  ;;  %s233_s27 = sshll.u32 %s424_s26, 4  ;;  %s425_s8 = smov [#allocation9]   ;;  %s234_s27 = int_to_ptr.vmem [resolvable:$true] %s233_s27 }
  0x1d   :  { %110 = vmatpush.msra.mxu0 %v87_v3  ;;  %v277_v42 = vld [vmem:[%s79_s20] ss:$0 sm:$0xff]  ;;  %s211_s11 = sshll.u32 %s425_s8, 4  ;;  %s213_s14 = sshll.u32 %s538_s7, 4  ;;  %s212_s11 = int_to_ptr.vmem [resolvable:$true] %s211_s11  ;;  %s214_s14 = int_to_ptr.hbm [resolvable:$true] %s213_s14 }
  0x1e   :  { %188 = vmatpush.msra.mxu1 %v161_v36 }
  0x1f   :  { %111 = vmatpush.msra.mxu0 %v86_v4 }
  0x20   :  { %189 = vmatpush.msra.mxu1 %v160_v37 }
  0x21   :  { %112 = vmatpush.msra.mxu0 %v85_v5 }
  0x23   :  { %113 = vmatpush.msra.mxu0 %v84_v6 }
  0x25   :  { %114 = vmatpush.msra.mxu0 %v83_v7 }
  0x26   :  { %262 = vmatmul.msk.f32.vlgmr.msra.gmra.mxu0 %vm95_vm0, %v81_v8 }
  0xa3   :  { %v116_v10 = vpop.f32.mrf.mxu0 }
  0xa4   :  { %v117_v11 = vadd.f32 %v276_v9, %v116_v10 }
  0xa6   :  { %278 = vtanh.f32 %v117_v11  ;;  %v263_v14 = vmul.f32 -1.442695, %v117_v11 }
  0xa8   :  { %280 = vpow2.f32 %v263_v14 }
  0xac   :  { %v279_v12 = vpop.eup %278 }
  0xad   :  { %145 = vrot.lane.b32.xlu0 %v279_v12, %s420_s13 }
  0xae   :  { %v281_v15 = vpop.eup %280 }
  0xaf   :  { %v122_v16 = vadd.f32 1.0, %v281_v15 }
  0xb1   :  { %282 = vrcp.f32 %v122_v16  ;;  %v134_v22 = vand.u32 2147483648, %v122_v16  ;;  %vm128_vm2 = vweird.f32 %v122_v16  ;;  %v132_v23 = vand.u32 2147483647, %v122_v16 }
  0xb3   :  { %v135_v25 = vor.u32 1.1754944e-38, %v134_v22  ;;  %vm133_vm4 = vcmp.eq.f32.partialorder %v132_v23, 8.507059e+37 }
  0xb5   :  { %140 = vrot.lane.b32.xlu0 %v82_v13, %s421_s16 }
  0xb7   :  { %v283_v17 = vpop.eup %282 }
  0xb8   :  { %v124_v18 = vmul.f32 %v283_v17, %v122_v16  ;;  %vm129_vm1 = vweird.f32 %v283_v17 }
  0xb9   :  { %vm130_vm3 = vmor %vm128_vm2, %vm129_vm1 }
  0xba   :  { %v125_v19 = vsub.f32 1.0, %v124_v18 }
  0xbc   :  { %v126_v20 = vmul.f32 %v283_v17, %v125_v19 }
  0xbe   :  { %v127_v21 = vadd.f32 %v283_v17, %v126_v20 }
  0xc0   :  { %v131_v24 = vsel %vm130_vm3, %v283_v17, %v127_v21 }
  0xc1   :  { %v136_v27 = vsel %vm133_vm4, %v135_v25, %v131_v24 }
 0x11f   :  { %v146_v26 = vpop.permute.xlu0 %145 }
 0x120   :  { %v148_v28 = vmul.f32 %v146_v26, %v136_v27 }
 0x122   :  { %150 = vrot.lane.b32.xlu1 %v148_v28, %s421_s16 }
 0x127   :  { %v141_v29 = vpop.permute.xlu0 %140 }
 0x128   :  { %v143_v30 = vmul.f32 %v141_v29, %v136_v27 }
 0x194   :  { %v151_v31 = vpop.permute.xlu1 %150 }
 0x195   :  { %v153_v32 = vadd.f32 %v151_v31, %v143_v30 }
 0x197   :  { %284 = vtanh.f32 %v153_v32 }
 0x19d   :  { %v285_v33 = vpop.eup %284 }
 0x19e   :  { %156 = vrot.lane.b32.xlu1 %v285_v33, %s420_s13 }
 0x210   :  { %v157_v38 = vpop.permute.xlu1 %156 }
 0x211   :  { %v159_v39 = vmul.f32 %v157_v38, %v136_v27 }
 0x213   :  { %169 = vrot.lane.b32.xlu2 %v159_v39, %s421_s16 }
 0x21b   :  { %202 = vrot.lane.b32.xlu2 %v153_v32, %s422_s21 }
 0x26d   :  { %v170_v40 = vpop.permute.xlu2 %169 }
 0x26e   :  { %200 = vst.msk [vmem:[#allocation10] sm:$0x3] %vm199_vm5, %v170_v40  ;;  %264 = vmatmul.msk.f32.vlgmr.msra.gmra.mxu1 %vm171_vm6, %v170_v40 }
 0x26f   :  { %227 = dma.vmem_to_hbm [thread:$0]  %s223_s23, 32, %s225_s25, [#allocation11]  }
 0x275   :  { %v203_v41 = vpop.permute.xlu2 %202 }
 0x276   :  { %205 = vst.msk [vmem:[#allocation12] sm:$0x3] %vm199_vm5, %v203_v41 }
 0x277   :  { %238 = dma.vmem_to_hbm [thread:$0]  %s234_s27, 32, %s236_s30, [#allocation11]  }
 0x2eb   :  { %v191_v43 = vpop.f32.mrf.mxu1 }
 0x2ec   :  { %v192_v44 = vadd.f32 %v277_v42, %v191_v43 }
 0x2ee   :  { %v194_v45 = vmul.f32 0.2, %v192_v44 }
 0x2f0   :  { %286 = vtanh.f32 %v194_v45 }
 0x2f6   :  { %v287_v46 = vpop.eup %286 }
 0x2f7   :  { %v196_v47 = vmul.f32 2.5, %v287_v46 }
 0x2f9   :  { %197 = vst [vmem:[#allocation9] sm:$0x3] %v196_v47 }
 0x2fa   :  { %216 = dma.vmem_to_hbm [thread:$0]  %s212_s11, 32, %s214_s14, [#allocation6]  }
 0x2fb   :  { %412 = dma.done.wait [#allocation6], 32  }
 0x2fc   :  { %413 = vsyncadd [#allocation6], 4294967264 }
 0x2fd   :  { %414 = dma.done.wait [#allocation11], 64  }
 0x2fe   :  { %415 = vsyncadd [#allocation11], 4294967232 }
 0x2ff   :  { %251 = vsyncpa [#allocation5], 1 }
 0x300   :  { %252 = vsyncpa [#allocation8], 1 }
 0x301   :  { %253 = vsyncpa [#allocation6], 1 }
 0x302   :  { %254 = vsyncpa [#allocation11], 1 }

</bundles_post_ra>
